<compile_context>
chip_gen: v5e
topology: v5e:2x2
jax: 0.10.0
libtpu: 0.0.40
codegen_flags: <defaults>
</compile_context>

<pallas_src>
import math

import jax
import jax.numpy as jnp
from jax.experimental import pallas as pl
from jax.experimental.pallas import tpu as pltpu


def _round_up(v, m):
    return (v + m - 1) // m * m


def _make_kernel(n_layers, in_p, hid_p):
    """Kernel over one batch tile; all widths already padded to 128."""

    def kernel(*refs):
        # refs = [x, (w0, b0), ..., (w_{L-1}, b_{L-1}), w_head, b_head, out, feats]
        x_ref = refs[0]
        w_refs = [refs[1 + 2 * i] for i in range(n_layers)]
        b_refs = [refs[2 + 2 * i] for i in range(n_layers)]
        wh_ref = refs[1 + 2 * n_layers]
        bh_ref = refs[2 + 2 * n_layers]
        o_ref = refs[3 + 2 * n_layers]
        feats_ref = refs[4 + 2 * n_layers]       # (tb, total_p) VMEM scratch

        # Stage the input block into the concat scratch (lane-aligned store).
        feats_ref[:, :in_p] = x_ref[...]

        off = in_p
        for i in range(n_layers):
            # ONE matmul per layer over the full (128-multiple) contraction dim.
            z = jnp.dot(feats_ref[:, :off], w_refs[i][...],
                        preferred_element_type=jnp.float32)
            z = z + b_refs[i][...]                       # bias broadcast (f32)
            h = jnp.where(z > 0.0, z, jnp.float32(0.01) * z)   # LeakyReLU(0.01)
            feats_ref[:, off:off + hid_p[i]] = h.astype(feats_ref.dtype)
            off += hid_p[i]

        out = jnp.dot(feats_ref[...], wh_ref[...],
                      preferred_element_type=jnp.float32)
        o_ref[...] = (out + bh_ref[...]).astype(o_ref.dtype)

    return kernel


def _pad_and_cast_params(params, in_features, hidden_sizes, out_features,
                         compute_dtype, lane=128):
    """Scatter the (in, out)-layout weights into lane-dense padded buffers whose
    row layout matches the padded DenseNet concat.  Padded rows/cols are zero,
    so padded feature columns stay exactly zero through every layer."""
    in_p = _round_up(in_features, lane)
    hid_p = [_round_up(h, lane) for h in hidden_sizes]
    out_p = _round_up(out_features, lane)

    orig_w = [in_features] + list(hidden_sizes)
    pad_w = [in_p] + hid_p
    orig_off, pad_off = [0], [0]
    for ow, pw in zip(orig_w, pad_w):
        orig_off.append(orig_off[-1] + ow)
        pad_off.append(pad_off[-1] + pw)

    padded = {}
    for i, h in enumerate(hidden_sizes):
        kp = in_p + sum(hid_p[:i])
        w = params[f"w{i}"].astype(compute_dtype)           # (K_i, h)
        wp = jnp.zeros((kp, hid_p[i]), compute_dtype)
        for j in range(i + 1):                              # blocks x, h0..h_{i-1}
            r0, r1 = orig_off[j], orig_off[j + 1]
            wp = wp.at[pad_off[j]:pad_off[j] + (r1 - r0), :h].set(w[r0:r1, :])
        padded[f"w{i}"] = wp
        bp = jnp.zeros((1, hid_p[i]), jnp.float32)
        padded[f"b{i}"] = bp.at[:, :h].set(params[f"b{i}"].astype(jnp.float32))

    total_p = in_p + sum(hid_p)
    wh = params["w_head"].astype(compute_dtype)
    whp = jnp.zeros((total_p, out_p), compute_dtype)
    for j in range(len(orig_w)):
        r0, r1 = orig_off[j], orig_off[j + 1]
        whp = whp.at[pad_off[j]:pad_off[j] + (r1 - r0), :out_features].set(
            wh[r0:r1, :])
    padded["w_head"] = whp
    bhp = jnp.zeros((1, out_p), jnp.float32)
    padded["b_head"] = bhp.at[:, :out_features].set(
        params["b_head"].astype(jnp.float32))

    return padded, in_p, hid_p, out_p, total_p


def skip_all_mlp(x, params, hidden_sizes, out_features, *,
                 batch_tile=256, compute_dtype=jnp.bfloat16):
    """x: (B, in_features). params: dict with w{i}/b{i} and w_head/b_head
    (weights stored (in, out), i.e. PyTorch weight.T)."""
    B, in_features = x.shape
    n_layers = len(hidden_sizes)
    out_dtype = x.dtype

    padded, in_p, hid_p, out_p, total_p = _pad_and_cast_params(
        params, in_features, hidden_sizes, out_features, compute_dtype)

    # Batch tiling: clamp the tile to the batch, keep it a sublane multiple,
    # pad the batch up so the grid divides evenly.
    tb = max(8, _round_up(min(batch_tile, B), 8))
    b_p = _round_up(B, tb)

    x_p = jnp.zeros((b_p, in_p), compute_dtype)
    x_p = x_p.at[:B, :in_features].set(x.astype(compute_dtype))

    operands = [x_p]
    in_specs = [pl.BlockSpec((tb, in_p), lambda i: (i, 0))]
    for li in range(n_layers):
        w, b = padded[f"w{li}"], padded[f"b{li}"]
        operands += [w, b]
        in_specs += [pl.BlockSpec(w.shape, lambda i: (0, 0)),   # resident weights
                     pl.BlockSpec(b.shape, lambda i: (0, 0))]
    wh, bh = padded["w_head"], padded["b_head"]
    operands += [wh, bh]
    in_specs += [pl.BlockSpec(wh.shape, lambda i: (0, 0)),
                 pl.BlockSpec(bh.shape, lambda i: (0, 0))]

    # Cost estimate + VMEM budget (v7x has 64 MiB per TC; leave headroom).
    itemsize = jnp.dtype(compute_dtype).itemsize
    mm_flops = 0
    for i in range(n_layers):
        mm_flops += 2 * b_p * (in_p + sum(hid_p[:i])) * hid_p[i]
    mm_flops += 2 * b_p * total_p * out_p
    weight_bytes = sum(int(v.size) * int(v.dtype.itemsize) for v in padded.values())
    bytes_accessed = (int(x_p.size) * itemsize + weight_bytes
                      + b_p * out_p * jnp.dtype(out_dtype).itemsize)
    io_block_bytes = (tb * in_p * itemsize
                      + tb * out_p * jnp.dtype(out_dtype).itemsize)
    scratch_bytes = tb * total_p * itemsize
    vmem_needed = 2 * io_block_bytes + 2 * weight_bytes + scratch_bytes
    vmem_limit = int(min(64 * 2**20, max(32 * 2**20, 2 * vmem_needed)))

    out_padded = pl.pallas_call(
        _make_kernel(n_layers, in_p, hid_p),
        out_shape=jax.ShapeDtypeStruct((b_p, out_p), out_dtype),
        grid_spec=pltpu.PrefetchScalarGridSpec(
            num_scalar_prefetch=0,
            grid=(b_p // tb,),
            in_specs=in_specs,
            out_specs=pl.BlockSpec((tb, out_p), lambda i: (i, 0)),
            scratch_shapes=[pltpu.VMEM((tb, total_p), compute_dtype)],
        ),
        compiler_params=pltpu.CompilerParams(
            dimension_semantics=("parallel",),
            vmem_limit_bytes=vmem_limit),
        cost_estimate=pl.CostEstimate(flops=int(mm_flops), transcendentals=0,
                                      bytes_accessed=int(bytes_accessed)),
    )(*operands)

    return out_padded[:B, :out_features]


def init_params(key, in_features, hidden_sizes, out_features, dtype=jnp.float32):
    """Xavier-uniform weights (gain=1), zero biases — matches xavier_init_."""
    params = {}
    dims_in = []
    running = in_features
    for h in hidden_sizes:
        dims_in.append(running)
        running += h
    penult = running

    keys = jax.random.split(key, len(hidden_sizes) + 1)
    for i, (fan_in, fan_out) in enumerate(zip(dims_in, hidden_sizes)):
        bound = math.sqrt(6.0 / (fan_in + fan_out))
        # stored as (in, out) = PyTorch weight.T ; same xavier bound
        params[f"w{i}"] = jax.random.uniform(
            keys[i], (fan_in, fan_out), dtype, minval=-bound, maxval=bound)
        params[f"b{i}"] = jnp.zeros((1, fan_out), dtype)
    bound = math.sqrt(6.0 / (penult + out_features))
    params["w_head"] = jax.random.uniform(
        keys[-1], (penult, out_features), dtype, minval=-bound, maxval=bound)
    params["b_head"] = jnp.zeros((1, out_features), dtype)
    return params


def reference_forward(x, params, hidden_sizes):
    """Pure-JAX replica of the PyTorch forward (concat-based) for checking."""
    cur = x
    for i in range(len(hidden_sizes)):
        z = cur @ params[f"w{i}"] + params[f"b{i}"]
        h = jnp.where(z > 0, z, 0.01 * z)
        cur = jnp.concatenate([cur, h], axis=-1)
    return cur @ params["w_head"] + params["b_head"]


if __name__ == "__main__":
    in_features = 16
    hidden_sizes = (32, 32)
    out_features = 8
    batch = 8

    key = jax.random.PRNGKey(0)
    kx, kp = jax.random.split(key)
    x = jax.random.normal(kx, (batch, in_features), jnp.float32)
    params = init_params(kp, in_features, hidden_sizes, out_features)
    ref = reference_forward(x, params, hidden_sizes)

    # f32 compute path: exact (tight tolerance).
    out_f32 = skip_all_mlp(x, params, hidden_sizes, out_features,
                           compute_dtype=jnp.float32)
    out_f32 = jax.block_until_ready(out_f32)
    assert out_f32.shape == (batch, out_features)
    assert jnp.allclose(out_f32, ref, atol=1e-5, rtol=1e-5), "f32 mismatch vs reference"

    # Default bf16 matmuls (f32 accumulation): MXU-friendly, looser tolerance.
    out_bf16 = skip_all_mlp(x, params, hidden_sizes, out_features)
    out_bf16 = jax.block_until_ready(out_bf16)
    assert out_bf16.shape == (batch, out_features)
    assert jnp.allclose(out_bf16, ref, atol=5e-2, rtol=5e-2), "bf16 mismatch vs reference"

    print("KERNEL_OK")
</pallas_src>

<mosaic_0001>
module attributes {stable_mosaic.version = 11 : i64} {
  func.func @kernel(%arg0: i32, %arg1: memref<8x128xf32, #tpu.memory_space<vmem>>, %arg2: memref<128x128xf32, #tpu.memory_space<vmem>>, %arg3: memref<1x128xf32, #tpu.memory_space<vmem>>, %arg4: memref<256x128xf32, #tpu.memory_space<vmem>>, %arg5: memref<1x128xf32, #tpu.memory_space<vmem>>, %arg6: memref<384x128xf32, #tpu.memory_space<vmem>>, %arg7: memref<1x128xf32, #tpu.memory_space<vmem>>, %arg8: memref<8x128xf32, #tpu.memory_space<vmem>>, %arg9: memref<8x384xf32, #tpu.memory_space<vmem>>) attributes {dimension_semantics = [#tpu.dimension_semantics<parallel>], iteration_bounds = array<i64: 1>, scalar_prefetch = 0 : i64, scratch_operands = 1 : i64, tpu.core_type = #tpu.core_type<tc>, window_params = [{transform_indices = @transform_0, window_bounds = array<i64: 8, 128>}, {pipeline_mode = #tpu.pipeline_mode<synchronous>, transform_indices = @transform_1, window_bounds = array<i64: 128, 128>}, {pipeline_mode = #tpu.pipeline_mode<synchronous>, transform_indices = @transform_2, window_bounds = array<i64: 1, 128>}, {pipeline_mode = #tpu.pipeline_mode<synchronous>, transform_indices = @transform_3, window_bounds = array<i64: 256, 128>}, {pipeline_mode = #tpu.pipeline_mode<synchronous>, transform_indices = @transform_4, window_bounds = array<i64: 1, 128>}, {pipeline_mode = #tpu.pipeline_mode<synchronous>, transform_indices = @transform_5, window_bounds = array<i64: 384, 128>}, {pipeline_mode = #tpu.pipeline_mode<synchronous>, transform_indices = @transform_6, window_bounds = array<i64: 1, 128>}, {transform_indices = @transform_7, window_bounds = array<i64: 8, 128>}]} {
    %c0 = arith.constant 0 : index
    %c0_0 = arith.constant 0 : index
    %0 = vector.load %arg1[%c0, %c0_0] : memref<8x128xf32, #tpu.memory_space<vmem>>, vector<8x128xf32>
    %c0_1 = arith.constant 0 : index
    %c0_2 = arith.constant 0 : index
    %1 = vector.load %arg9[%c0_1, %c0_2] : memref<8x384xf32, #tpu.memory_space<vmem>>, vector<8x128xf32>
    tpu.vector_store %arg9[%c0_1, %c0_2], %0 {strides = array<i32>} : memref<8x384xf32, #tpu.memory_space<vmem>>, vector<8x128xf32>,
    %c0_3 = arith.constant 0 : index
    %c0_4 = arith.constant 0 : index
    %2 = vector.load %arg9[%c0_3, %c0_4] : memref<8x384xf32, #tpu.memory_space<vmem>>, vector<8x128xf32>
    %c0_5 = arith.constant 0 : index
    %c0_6 = arith.constant 0 : index
    %3 = vector.load %arg2[%c0_5, %c0_6] : memref<128x128xf32, #tpu.memory_space<vmem>>, vector<128x128xf32>
    %cst = arith.constant dense<0.000000e+00> : vector<8x128xf32>
    %4 = tpu.matmul %2, %3, %cst {dimension_numbers = #tpu.dot_dimension_numbers<[1], [0], [0], [1], [0, 0, 1, 1], [], []>} : vector<8x128xf32>, vector<128x128xf32>, vector<8x128xf32> -> vector<8x128xf32>
    %c0_7 = arith.constant 0 : index
    %c0_8 = arith.constant 0 : index
    %5 = vector.load %arg3[%c0_7, %c0_8] : memref<1x128xf32, #tpu.memory_space<vmem>>, vector<1x128xf32>
    %6 = vector.broadcast %5 : vector<1x128xf32> to vector<8x128xf32>
    %7 = arith.addf %4, %6 : vector<8x128xf32>
    %cst_9 = arith.constant 0.000000e+00 : f32
    %8 = vector.broadcast %cst_9 : f32 to vector<8x128xf32>
    %9 = arith.cmpf ogt, %7, %8 : vector<8x128xf32>
    %cst_10 = arith.constant 0.00999999977 : f32
    %10 = vector.broadcast %cst_10 : f32 to vector<8x128xf32>
    %11 = arith.mulf %10, %7 : vector<8x128xf32>
    %12 = arith.select %9, %7, %11 : vector<8x128xi1>, vector<8x128xf32>
    %c0_11 = arith.constant 0 : index
    %c128 = arith.constant 128 : index
    %13 = vector.load %arg9[%c0_11, %c128] : memref<8x384xf32, #tpu.memory_space<vmem>>, vector<8x128xf32>
    tpu.vector_store %arg9[%c0_11, %c128], %12 {strides = array<i32>} : memref<8x384xf32, #tpu.memory_space<vmem>>, vector<8x128xf32>,
    %c0_12 = arith.constant 0 : index
    %c0_13 = arith.constant 0 : index
    %14 = vector.load %arg9[%c0_12, %c0_13] : memref<8x384xf32, #tpu.memory_space<vmem>>, vector<8x256xf32>
    %c0_14 = arith.constant 0 : index
    %c0_15 = arith.constant 0 : index
    %15 = vector.load %arg4[%c0_14, %c0_15] : memref<256x128xf32, #tpu.memory_space<vmem>>, vector<256x128xf32>
    %cst_16 = arith.constant dense<0.000000e+00> : vector<8x128xf32>
    %16 = tpu.matmul %14, %15, %cst_16 {dimension_numbers = #tpu.dot_dimension_numbers<[1], [0], [0], [1], [0, 0, 1, 1], [], []>} : vector<8x256xf32>, vector<256x128xf32>, vector<8x128xf32> -> vector<8x128xf32>
    %c0_17 = arith.constant 0 : index
    %c0_18 = arith.constant 0 : index
    %17 = vector.load %arg5[%c0_17, %c0_18] : memref<1x128xf32, #tpu.memory_space<vmem>>, vector<1x128xf32>
    %18 = vector.broadcast %17 : vector<1x128xf32> to vector<8x128xf32>
    %19 = arith.addf %16, %18 : vector<8x128xf32>
    %cst_19 = arith.constant 0.000000e+00 : f32
    %20 = vector.broadcast %cst_19 : f32 to vector<8x128xf32>
    %21 = arith.cmpf ogt, %19, %20 : vector<8x128xf32>
    %cst_20 = arith.constant 0.00999999977 : f32
    %22 = vector.broadcast %cst_20 : f32 to vector<8x128xf32>
    %23 = arith.mulf %22, %19 : vector<8x128xf32>
    %24 = arith.select %21, %19, %23 : vector<8x128xi1>, vector<8x128xf32>
    %c0_21 = arith.constant 0 : index
    %c256 = arith.constant 256 : index
    %25 = vector.load %arg9[%c0_21, %c256] : memref<8x384xf32, #tpu.memory_space<vmem>>, vector<8x128xf32>
    tpu.vector_store %arg9[%c0_21, %c256], %24 {strides = array<i32>} : memref<8x384xf32, #tpu.memory_space<vmem>>, vector<8x128xf32>,
    %c0_22 = arith.constant 0 : index
    %c0_23 = arith.constant 0 : index
    %26 = vector.load %arg9[%c0_22, %c0_23] : memref<8x384xf32, #tpu.memory_space<vmem>>, vector<8x384xf32>
    %c0_24 = arith.constant 0 : index
    %c0_25 = arith.constant 0 : index
    %27 = vector.load %arg6[%c0_24, %c0_25] : memref<384x128xf32, #tpu.memory_space<vmem>>, vector<384x128xf32>
    %cst_26 = arith.constant dense<0.000000e+00> : vector<8x128xf32>
    %28 = tpu.matmul %26, %27, %cst_26 {dimension_numbers = #tpu.dot_dimension_numbers<[1], [0], [0], [1], [0, 0, 1, 1], [], []>} : vector<8x384xf32>, vector<384x128xf32>, vector<8x128xf32> -> vector<8x128xf32>
    %c0_27 = arith.constant 0 : index
    %c0_28 = arith.constant 0 : index
    %29 = vector.load %arg7[%c0_27, %c0_28] : memref<1x128xf32, #tpu.memory_space<vmem>>, vector<1x128xf32>
    %30 = vector.broadcast %29 : vector<1x128xf32> to vector<8x128xf32>
    %31 = arith.addf %28, %30 : vector<8x128xf32>
    %c0_29 = arith.constant 0 : index
    %c0_30 = arith.constant 0 : index
    %32 = vector.load %arg8[%c0_29, %c0_30] : memref<8x128xf32, #tpu.memory_space<vmem>>, vector<8x128xf32>
    tpu.vector_store %arg8[%c0_29, %c0_30], %31 {strides = array<i32>} : memref<8x128xf32, #tpu.memory_space<vmem>>, vector<8x128xf32>,
    return
  }
  func.func @transform_0(%arg0: i32) -> (i32, i32) {
    %c0_i32 = arith.constant 0 : i32
    %c0_i32_0 = arith.constant 0 : i32
    return %arg0, %c0_i32 : i32, i32
  }
  func.func @transform_1(%arg0: i32) -> (i32, i32) {
    %c0_i32 = arith.constant 0 : i32
    %c0_i32_0 = arith.constant 0 : i32
    %c0_i32_1 = arith.constant 0 : i32
    return %c0_i32, %c0_i32_0 : i32, i32
  }
  func.func @transform_2(%arg0: i32) -> (i32, i32) {
    %c0_i32 = arith.constant 0 : i32
    %c0_i32_0 = arith.constant 0 : i32
    %c0_i32_1 = arith.constant 0 : i32
    return %c0_i32, %c0_i32_0 : i32, i32
  }
  func.func @transform_3(%arg0: i32) -> (i32, i32) {
    %c0_i32 = arith.constant 0 : i32
    %c0_i32_0 = arith.constant 0 : i32
    %c0_i32_1 = arith.constant 0 : i32
    return %c0_i32, %c0_i32_0 : i32, i32
  }
  func.func @transform_4(%arg0: i32) -> (i32, i32) {
    %c0_i32 = arith.constant 0 : i32
    %c0_i32_0 = arith.constant 0 : i32
    %c0_i32_1 = arith.constant 0 : i32
    return %c0_i32, %c0_i32_0 : i32, i32
  }
  func.func @transform_5(%arg0: i32) -> (i32, i32) {
    %c0_i32 = arith.constant 0 : i32
    %c0_i32_0 = arith.constant 0 : i32
    %c0_i32_1 = arith.constant 0 : i32
    return %c0_i32, %c0_i32_0 : i32, i32
  }
  func.func @transform_6(%arg0: i32) -> (i32, i32) {
    %c0_i32 = arith.constant 0 : i32
    %c0_i32_0 = arith.constant 0 : i32
    %c0_i32_1 = arith.constant 0 : i32
    return %c0_i32, %c0_i32_0 : i32, i32
  }
  func.func @transform_7(%arg0: i32) -> (i32, i32) {
    %c0_i32 = arith.constant 0 : i32
    %c0_i32_0 = arith.constant 0 : i32
    return %arg0, %c0_i32 : i32, i32
  }
}

</mosaic_0001>

<bundles_post_ra>
// kernel: tpu_custom_call.1
= control target key start
LH: loop header
LB: loop body
LE: loop exit
PB: predicated region body
PF: predicated region fallthrough
CT: control target
= control target key end

     0   :  { %12 = vsyncpa [#allocation4], 0  ;;  %s566_s0 = inlined_call_operand.hbm [shape: f32[8,128], index: 0, kind: input, shape index: {}]   ;;  %s567_s1 = inlined_call_operand.hbm [shape: f32[128,128], index: 1, kind: input, shape index: {}]   ;;  %s568_s2 = inlined_call_operand.vmem [shape: f32[1,128], index: 2, kind: input, shape index: {}]   ;;  %s569_s3 = inlined_call_operand.hbm [shape: f32[256,128], index: 3, kind: input, shape index: {}]   ;;  %s570_s4 = inlined_call_operand.vmem [shape: f32[1,128], index: 4, kind: input, shape index: {}]   ;;  %s571_s5 = inlined_call_operand.hbm [shape: f32[384,128], index: 5, kind: input, shape index: {}]   ;;  %s572_s6 = inlined_call_operand.vmem [shape: f32[1,128], index: 6, kind: input, shape index: {}]   ;;  %s573_s7 = inlined_call_operand.hbm [shape: f32[8,128], index: 7, kind: output, shape index: {}]  }
   0x1   :  { %13 = vsyncpa [#allocation7], 0 }
   0x2   :  { %14 = vsyncpa [#allocation10], 0  ;;  %s31_s26 = sshll.u32 %s567_s1, 4  ;;  %s32_s26 = int_to_ptr.hbm [resolvable:$true] %s31_s26 }
   0x3   :  { %15 = vsyncpa [#allocation5], 0  ;;  %s490_s27 = smov [#allocation6]   ;;  %s21_s8 = sshll.u32 %s566_s0, 4  ;;  %s22_s8 = int_to_ptr.hbm [resolvable:$true] %s21_s8 }
   0x4   :  { %s33_s28 = sshll.u32 %s490_s27, 4  ;;  %s491_s9 = smov 128   ;;  %s34_s28 = int_to_ptr.vmem [resolvable:$true] %s33_s28 }
   0x5   :  { %s492_s10 = smov 8   ;;  %s493_s11 = smov [#allocation3]  }
   0x6   :  { %39 = dma.hbm_to_vmem [thread:$0]  %s32_s26, 2048, %s34_s28, [#allocation7], %s491_s9, %s491_s9, %s492_s10  }
   0x7   :  { %s23_s12 = sshll.u32 %s493_s11, 4  ;;  %s46_s15 = sshll.u32 %s569_s3, 4  ;;  %s24_s12 = int_to_ptr.vmem [resolvable:$true] %s23_s12  ;;  %s47_s15 = int_to_ptr.hbm [resolvable:$true] %s46_s15 }
   0x8   :  { %26 = dma.hbm_to_vmem [thread:$0]  %s22_s8, 128, %s24_s12, [#allocation4]  }
   0x9   :  { %s61_s17 = sshll.u32 %s571_s5, 4  ;;  %s494_s18 = smov [#allocation8]   ;;  %s62_s17 = int_to_ptr.hbm [resolvable:$true] %s61_s17 }
   0xa   :  { %s48_s19 = sshll.u32 %s494_s18, 4  ;;  %s495_s0 = smov [#allocation9]   ;;  %s49_s19 = int_to_ptr.vmem [resolvable:$true] %s48_s19 }
   0xb   :  { %54 = dma.hbm_to_vmem [thread:$0]  %s47_s15, 4096, %s49_s19, [#allocation7], %s491_s9, %s491_s9, %s492_s10  }
   0xc   :  { %s63_s20 = sshll.u32 %s495_s0, 4  ;;  %s64_s20 = int_to_ptr.vmem [resolvable:$true] %s63_s20 }
   0xd   :  { %69 = dma.hbm_to_vmem [thread:$0]  %s62_s17, 6144, %s64_s20, [#allocation10], %s491_s9, %s491_s9, %s492_s10  }
   0xe   :  { %482 = dma.done.wait [#allocation4], 128  }
   0xf   :  { %483 = vsyncadd [#allocation4], 4294967168 }
  0x10   :  { %484 = dma.done.wait [#allocation7], 6144  }
  0x11   :  { %485 = vsyncadd [#allocation7], 4294961152 }
  0x12   :  { %486 = dma.done.wait [#allocation10], 6144  }
  0x13   :  { %487 = vsyncadd [#allocation10], 4294961152  ;;  %v106_v0 = vld [vmem:[#allocation6 + $0x78] sm:$0xff]  ;;  %v105_v1 = vld [vmem:[#allocation6 + $0x70] sm:$0xff]  ;;  %s496_s24 = smov [#allocation11]  }
  0x14   :  { %111 = vmatpush.msra.mxu0 %v106_v0  ;;  %v104_v2 = vld [vmem:[#allocation6 + $0x68] sm:$0xff]  ;;  %v103_v3 = vld [vmem:[#allocation6 + $0x60] sm:$0xff]  ;;  %v235_v4 = vld [vmem:[#allocation9 + $0x78] sm:$0xff]  ;;  %s338_s25 = sshll.u32 %s496_s24, 4  ;;  %s339_s25 = int_to_ptr.vmem [resolvable:$true] %s338_s25 }
  0x15   :  { %v102_v5 = vld [vmem:[#allocation6 + $0x58] sm:$0xff]  ;;  %272 = vmatpush.msra.mxu3 %v235_v4  ;;  %v234_v6 = vld [vmem:[#allocation9 + $0x70] sm:$0xff]  ;;  %v233_v7 = vld [vmem:[#allocation9 + $0x68] sm:$0xff] }
  0x16   :  { %112 = vmatpush.msra.mxu0 %v105_v1  ;;  %v168_v8 = vld [vmem:[#allocation8 + $0xf8] sm:$0xff]  ;;  %v101_v9 = vld [vmem:[#allocation6 + $0x50] sm:$0xff]  ;;  %v232_v11 = vld [vmem:[#allocation9 + $0x60] sm:$0xff] }
  0x17   :  { %273 = vmatpush.msra.mxu3 %v234_v6  ;;  %193 = vmatpush.msra.mxu2 %v168_v8  ;;  %v167_v10 = vld [vmem:[#allocation8 + $0xf0] sm:$0xff]  ;;  %v152_v12 = vld [vmem:[#allocation8 + $0x78] sm:$0xff]  ;;  %v166_v13 = vld [vmem:[#allocation8 + $0xe8] sm:$0xff] }
  0x18   :  { %113 = vmatpush.msra.mxu0 %v104_v2  ;;  %v100_v14 = vld [vmem:[#allocation6 + $0x48] sm:$0xff]  ;;  %v151_v15 = vld [vmem:[#allocation8 + $0x70] sm:$0xff]  ;;  %v231_v16 = vld [vmem:[#allocation9 + $0x58] sm:$0xff]  ;;  %173 = vmatpush.msra.mxu1 %v152_v12 }
  0x19   :  { %274 = vmatpush.msra.mxu3 %v233_v7  ;;  %194 = vmatpush.msra.mxu2 %v167_v10  ;;  %v165_v17 = vld [vmem:[#allocation8 + $0xe0] sm:$0xff]  ;;  %v150_v19 = vld [vmem:[#allocation8 + $0x68] sm:$0xff]  ;;  %v230_v20 = vld [vmem:[#allocation9 + $0x50] sm:$0xff] }
  0x1a   :  { %114 = vmatpush.msra.mxu0 %v103_v3  ;;  %v99_v18 = vld [vmem:[#allocation6 + $0x40] sm:$0xff]  ;;  %174 = vmatpush.msra.mxu1 %v151_v15  ;;  %v164_v21 = vld [vmem:[#allocation8 + $0xd8] sm:$0xff]  ;;  %v229_v24 = vld [vmem:[#allocation9 + $0x48] sm:$0xff] }
  0x1b   :  { %275 = vmatpush.msra.mxu3 %v232_v11  ;;  %195 = vmatpush.msra.mxu2 %v166_v13  ;;  %v98_v22 = vld [vmem:[#allocation6 + $0x38] sm:$0xff]  ;;  %v149_v23 = vld [vmem:[#allocation8 + $0x60] sm:$0xff]  ;;  %v163_v25 = vld [vmem:[#allocation8 + $0xd0] sm:$0xff] }
  0x1c   :  { %115 = vmatpush.msra.mxu0 %v102_v5  ;;  %175 = vmatpush.msra.mxu1 %v150_v19  ;;  %v97_v26 = vld [vmem:[#allocation6 + $0x30] sm:$0xff]  ;;  %v148_v27 = vld [vmem:[#allocation8 + $0x58] sm:$0xff]  ;;  %v228_v28 = vld [vmem:[#allocation9 + $0x40] sm:$0xff] }
  0x1d   :  { %276 = vmatpush.msra.mxu3 %v231_v16  ;;  %196 = vmatpush.msra.mxu2 %v165_v17  ;;  %v162_v29 = vld [vmem:[#allocation8 + $0xc8] sm:$0xff]  ;;  %v147_v31 = vld [vmem:[#allocation8 + $0x50] sm:$0xff]  ;;  %v227_v32 = vld [vmem:[#allocation9 + $0x38] sm:$0xff] }
  0x1e   :  { %116 = vmatpush.msra.mxu0 %v101_v9  ;;  %176 = vmatpush.msra.mxu1 %v149_v23  ;;  %v96_v30 = vld [vmem:[#allocation6 + $0x28] sm:$0xff]  ;;  %v161_v33 = vld [vmem:[#allocation8 + $0xc0] sm:$0xff]  ;;  %v94_v36 = vld [vmem:[#allocation6 + $0x18] sm:$0xff] }
  0x1f   :  { %277 = vmatpush.msra.mxu3 %v230_v20  ;;  %197 = vmatpush.msra.mxu2 %v164_v21  ;;  %v95_v34 = vld [vmem:[#allocation6 + $0x20] sm:$0xff]  ;;  %v146_v35 = vld [vmem:[#allocation8 + $0x48] sm:$0xff]  ;;  %v226_v37 = vld [vmem:[#allocation9 + $0x30] sm:$0xff] }
  0x20   :  { %117 = vmatpush.msra.mxu0 %v100_v14  ;;  %177 = vmatpush.msra.mxu1 %v148_v27  ;;  %v160_v38 = vld [vmem:[#allocation8 + $0xb8] sm:$0xff]  ;;  %v145_v39 = vld [vmem:[#allocation8 + $0x40] sm:$0xff]  ;;  %v225_v40 = vld [vmem:[#allocation9 + $0x28] sm:$0xff] }
  0x21   :  { %278 = vmatpush.msra.mxu3 %v229_v24  ;;  %198 = vmatpush.msra.mxu2 %v163_v25  ;;  %v159_v41 = vld [vmem:[#allocation8 + $0xb0] sm:$0xff]  ;;  %v144_v43 = vld [vmem:[#allocation8 + $0x38] sm:$0xff]  ;;  %v224_v44 = vld [vmem:[#allocation9 + $0x20] sm:$0xff] }
  0x22   :  { %118 = vmatpush.msra.mxu0 %v99_v18  ;;  %178 = vmatpush.msra.mxu1 %v147_v31  ;;  %v93_v42 = vld [vmem:[#allocation6 + $0x10] sm:$0xff]  ;;  %v158_v45 = vld [vmem:[#allocation8 + $0xa8] sm:$0xff]  ;;  %v223_v48 = vld [vmem:[#allocation9 + $0x18] sm:$0xff] }
  0x23   :  { %279 = vmatpush.msra.mxu3 %v228_v28  ;;  %199 = vmatpush.msra.mxu2 %v162_v29  ;;  %v92_v46 = vld [vmem:[#allocation6 + $0x8] sm:$0xff]  ;;  %v143_v47 = vld [vmem:[#allocation8 + $0x30] sm:$0xff]  ;;  %v157_v49 = vld [vmem:[#allocation8 + $0xa0] sm:$0xff] }
  0x24   :  { %119 = vmatpush.msra.mxu0 %v98_v22  ;;  %179 = vmatpush.msra.mxu1 %v146_v35  ;;  %v91_v50 = vld [vmem:[#allocation6] sm:$0xff]  ;;  %v142_v51 = vld [vmem:[#allocation8 + $0x28] sm:$0xff]  ;;  %v549_v52 = vld [vmem:[#allocation3] sm:$0xff] }
  0x25   :  { %280 = vmatpush.msra.mxu3 %v227_v32  ;;  %200 = vmatpush.msra.mxu2 %v161_v33  ;;  %v222_v53 = vld [vmem:[#allocation9 + $0x10] sm:$0xff]  ;;  %v251_v54 = vld [vmem:[#allocation9 + $0xf8] sm:$0xff]  ;;  %v221_v56 = vld [vmem:[#allocation9 + $0x8] sm:$0xff] }
  0x26   :  { %120 = vmatpush.msra.mxu0 %v97_v26  ;;  %180 = vmatpush.msra.mxu1 %v145_v39  ;;  %v156_v55 = vld [vmem:[#allocation8 + $0x98] sm:$0xff]  ;;  %v250_v57 = vld [vmem:[#allocation9 + $0xf0] sm:$0xff]  ;;  %v220_v58 = vld [vmem:[#allocation9] sm:$0xff] }
  0x27   :  { %281 = vmatpush.msra.mxu3 %v226_v37  ;;  %201 = vmatpush.msra.mxu2 %v160_v38  ;;  %v249_v59 = vld [vmem:[#allocation9 + $0xe8] sm:$0xff]  ;;  %v248_v60 = vld [vmem:[#allocation9 + $0xe0] sm:$0xff]  ;;  %v247_v61 = vld [vmem:[#allocation9 + $0xd8] sm:$0xff] }
  0x28   :  { %121 = vmatpush.msra.mxu0 %v96_v30  ;;  %181 = vmatpush.msra.mxu1 %v144_v43  ;;  %v246_v62 = vld [vmem:[#allocation9 + $0xd0] sm:$0xff]  ;;  %v245_v63 = vld [vmem:[#allocation9 + $0xc8] sm:$0xff]  ;;  %v244_v0 = vld [vmem:[#allocation9 + $0xc0] sm:$0xff] }
  0x29   :  { %282 = vmatpush.msra.mxu3 %v225_v40  ;;  %202 = vmatpush.msra.mxu2 %v159_v41  ;;  %v243_v1 = vld [vmem:[#allocation9 + $0xb8] sm:$0xff]  ;;  %v242_v2 = vld [vmem:[#allocation9 + $0xb0] sm:$0xff]  ;;  %v241_v3 = vld [vmem:[#allocation9 + $0xa8] sm:$0xff] }
  0x2a   :  { %122 = vmatpush.msra.mxu0 %v95_v34  ;;  %182 = vmatpush.msra.mxu1 %v143_v47  ;;  %v240_v4 = vld [vmem:[#allocation9 + $0xa0] sm:$0xff]  ;;  %v239_v5 = vld [vmem:[#allocation9 + $0x98] sm:$0xff]  ;;  %v155_v7 = vld [vmem:[#allocation8 + $0x90] sm:$0xff] }
  0x2b   :  { %283 = vmatpush.msra.mxu3 %v224_v44  ;;  %203 = vmatpush.msra.mxu2 %v158_v45  ;;  %v141_v6 = vld [vmem:[#allocation8 + $0x20] sm:$0xff]  ;;  %v238_v8 = vld [vmem:[#allocation9 + $0x90] sm:$0xff]  ;;  %v140_v9 = vld [vmem:[#allocation8 + $0x18] sm:$0xff] }
  0x2c   :  { %123 = vmatpush.msra.mxu0 %v94_v36  ;;  %183 = vmatpush.msra.mxu1 %v142_v51  ;;  %v154_v10 = vld [vmem:[#allocation8 + $0x88] sm:$0xff]  ;;  %v139_v12 = vld [vmem:[#allocation8 + $0x10] sm:$0xff]  ;;  %v153_v13 = vld [vmem:[#allocation8 + $0x80] sm:$0xff] }
  0x2d   :  { %284 = vmatpush.msra.mxu3 %v223_v48  ;;  %204 = vmatpush.msra.mxu2 %v157_v49  ;;  %v237_v11 = vld [vmem:[#allocation9 + $0x88] sm:$0xff]  ;;  %v236_v14 = vld [vmem:[#allocation9 + $0x80] sm:$0xff]  ;;  %v267_v17 = vld [vmem:[#allocation9 + $0x178] sm:$0xff] }
  0x2e   :  { %124 = vmatpush.msra.mxu0 %v93_v42  ;;  %184 = vmatpush.msra.mxu1 %v141_v6  ;;  %v138_v15 = vld [vmem:[#allocation8 + $0x8] sm:$0xff]  ;;  %v137_v16 = vld [vmem:[#allocation8] sm:$0xff]  ;;  %v266_v18 = vld [vmem:[#allocation9 + $0x170] sm:$0xff] }
  0x2f   :  { %285 = vmatpush.msra.mxu3 %v222_v53  ;;  %205 = vmatpush.msra.mxu2 %v156_v55  ;;  %v265_v19 = vld [vmem:[#allocation9 + $0x168] sm:$0xff]  ;;  %v264_v20 = vld [vmem:[#allocation9 + $0x160] sm:$0xff]  ;;  %v263_v21 = vld [vmem:[#allocation9 + $0x158] sm:$0xff] }
  0x30   :  { %125 = vmatpush.msra.mxu0 %v92_v46  ;;  %185 = vmatpush.msra.mxu1 %v140_v9  ;;  %v262_v22 = vld [vmem:[#allocation9 + $0x150] sm:$0xff]  ;;  %v261_v23 = vld [vmem:[#allocation9 + $0x148] sm:$0xff]  ;;  %v260_v24 = vld [vmem:[#allocation9 + $0x140] sm:$0xff] }
  0x31   :  { %286 = vmatpush.msra.mxu3 %v221_v56  ;;  %206 = vmatpush.msra.mxu2 %v155_v7  ;;  %v259_v25 = vld [vmem:[#allocation9 + $0x138] sm:$0xff]  ;;  %v258_v26 = vld [vmem:[#allocation9 + $0x130] sm:$0xff]  ;;  %v257_v32 = vld [vmem:[#allocation9 + $0x128] sm:$0xff] }
  0x32   :  { %126 = vmatpush.msra.mxu0 %v91_v50  ;;  %186 = vmatpush.msra.mxu1 %v139_v12  ;;  %v359_v27 = vld [vmem:[%s568_s2] ss:$0 sm:$0xff]  ;;  %v256_v33 = vld [vmem:[#allocation9 + $0x120] sm:$0xff]  ;;  %v254_v35 = vld [vmem:[#allocation9 + $0x110] sm:$0xff] }
  0x33   :  { %127 = vmatmul.f32.vlgmr.msra.gmra.mxu0 %v549_v52  ;;  %287 = vmatpush.msra.mxu3 %v220_v58  ;;  %v255_v34 = vld [vmem:[#allocation9 + $0x118] sm:$0xff]  ;;  %v253_v36 = vld [vmem:[#allocation9 + $0x108] sm:$0xff]  ;;  %v252_v37 = vld [vmem:[#allocation9 + $0x100] sm:$0xff] }
  0x34   :  { %292 = vmatpush.msrb.mxu0 %v251_v54  ;;  %288 = vmatmul.f32.vlgmr.msra.gmra.mxu3 %v549_v52  ;;  %v361_v38 = vld [vmem:[%s570_s4] ss:$0 sm:$0xff]  ;;  %s340_s4 = sshll.u32 %s573_s7, 4  ;;  %s341_s4 = int_to_ptr.hbm [resolvable:$true] %s340_s4 }
  0x35   :  { %207 = vmatpush.msra.mxu2 %v154_v10  ;;  %187 = vmatpush.msra.mxu1 %v138_v15  ;;  %v360_v45 = vld [vmem:[%s572_s6] ss:$0 sm:$0xff] }
  0x36   :  { %293 = vmatpush.msrb.mxu0 %v250_v57 }
  0x37   :  { %208 = vmatpush.msra.mxu2 %v153_v13  ;;  %188 = vmatpush.msra.mxu1 %v137_v16 }
  0x38   :  { %294 = vmatpush.msrb.mxu0 %v249_v59  ;;  %189 = vmatmul.f32.vlgmr.msra.gmra.mxu1 %v549_v52 }
  0x39   :  { %312 = vmatpush.msrb.mxu1 %v267_v17 }
  0x3a   :  { %295 = vmatpush.msrb.mxu0 %v248_v60 }
  0x3b   :  { %313 = vmatpush.msrb.mxu1 %v266_v18 }
  0x3c   :  { %296 = vmatpush.msrb.mxu0 %v247_v61 }
  0x3d   :  { %314 = vmatpush.msrb.mxu1 %v265_v19 }
  0x3e   :  { %297 = vmatpush.msrb.mxu0 %v246_v62 }
  0x3f   :  { %315 = vmatpush.msrb.mxu1 %v264_v20 }
  0x40   :  { %298 = vmatpush.msrb.mxu0 %v245_v63 }
  0x41   :  { %316 = vmatpush.msrb.mxu1 %v263_v21 }
  0x42   :  { %299 = vmatpush.msrb.mxu0 %v244_v0 }
  0x43   :  { %317 = vmatpush.msrb.mxu1 %v262_v22 }
  0x44   :  { %300 = vmatpush.msrb.mxu0 %v243_v1 }
  0x45   :  { %318 = vmatpush.msrb.mxu1 %v261_v23 }
  0x46   :  { %301 = vmatpush.msrb.mxu0 %v242_v2 }
  0x47   :  { %319 = vmatpush.msrb.mxu1 %v260_v24 }
  0x48   :  { %302 = vmatpush.msrb.mxu0 %v241_v3 }
  0x49   :  { %320 = vmatpush.msrb.mxu1 %v259_v25 }
  0x4a   :  { %303 = vmatpush.msrb.mxu0 %v240_v4 }
  0x4b   :  { %321 = vmatpush.msrb.mxu1 %v258_v26 }
  0x4c   :  { %304 = vmatpush.msrb.mxu0 %v239_v5 }
  0x4d   :  { %322 = vmatpush.msrb.mxu1 %v257_v32 }
  0x4e   :  { %305 = vmatpush.msrb.mxu0 %v238_v8 }
  0x4f   :  { %323 = vmatpush.msrb.mxu1 %v256_v33 }
  0x50   :  { %306 = vmatpush.msrb.mxu0 %v237_v11 }
  0x51   :  { %324 = vmatpush.msrb.mxu1 %v255_v34 }
  0x52   :  { %307 = vmatpush.msrb.mxu0 %v236_v14 }
  0x53   :  { %325 = vmatpush.msrb.mxu1 %v254_v35 }
  0x55   :  { %326 = vmatpush.msrb.mxu1 %v253_v36 }
  0x57   :  { %327 = vmatpush.msrb.mxu1 %v252_v37 }
  0xb0   :  { %v128_v28 = vpop.f32.mrf.mxu0 }
  0xb1   :  { %v129_v29 = vadd.f32 %v359_v27, %v128_v28 }
  0xb3   :  { %vm131_vm0 = vcmp.gt.f32.partialorder %v129_v29, 0.0  ;;  %v132_v30 = vmul.f32 0.01, %v129_v29 }
  0xb5   :  { %v133_v31 = vsel %vm131_vm0, %v129_v29, %v132_v30  ;;  %v190_v39 = vpop.f32.mrf.mxu1 }
  0xb6   :  { %209 = vmatmul.f32.vlgmr.msra.gmra.mxu2 %v133_v31  ;;  %308 = vmatmul.f32.vlgmr.msrb.gmra.mxu0 %v133_v31  ;;  %v191_v40 = vadd.f32 %v361_v38, %v190_v39 }
  0xb7   :  { %v289_v46 = vpop.f32.mrf.mxu3 }
  0xb8   :  { %v290_v47 = vadd.f32 %v360_v45, %v289_v46 }
 0x133   :  { %v309_v48 = vpop.f32.mrf.mxu0 }
 0x134   :  { %v310_v49 = vadd.f32 %v309_v48, %v290_v47 }
 0x139   :  { %v210_v41 = vpop.f32.mrf.mxu2 }
 0x13a   :  { %v211_v42 = vadd.f32 %v210_v41, %v191_v40 }
 0x13c   :  { %v214_v43 = vmul.f32 0.01, %v211_v42  ;;  %vm213_vm1 = vcmp.gt.f32.partialorder %v211_v42, 0.0 }
 0x13e   :  { %v215_v44 = vsel %vm213_vm1, %v211_v42, %v214_v43 }
 0x13f   :  { %328 = vmatmul.f32.vlgmr.msrb.gmra.mxu1 %v215_v44 }
 0x1bc   :  { %v329_v50 = vpop.f32.mrf.mxu1 }
 0x1bd   :  { %v330_v51 = vadd.f32 %v329_v50, %v310_v49 }
 0x1bf   :  { %332 = vst [vmem:[#allocation11] sm:$0xff] %v330_v51 }
 0x1c0   :  { %343 = dma.vmem_to_hbm [thread:$0]  %s339_s25, 128, %s341_s4, [#allocation5]  }
 0x1c1   :  { %488 = dma.done.wait [#allocation5], 128  }
 0x1c2   :  { %489 = vsyncadd [#allocation5], 4294967168 }
 0x1c3   :  { %348 = vsyncpa [#allocation4], 1 }
 0x1c4   :  { %349 = vsyncpa [#allocation7], 1 }
 0x1c5   :  { %350 = vsyncpa [#allocation10], 1 }
 0x1c6   :  { %351 = vsyncpa [#allocation5], 1 }

</bundles_post_ra>
